<compile_context>
chip_gen: v7x
topology: tpu7x:2x2x1
jax: 0.10.0
libtpu: 0.0.40
codegen_flags: <defaults>
</compile_context>

<pallas_src>
import functools

import jax
import jax.numpy as jnp
from jax.experimental import pallas as pl
from jax.experimental.pallas import tpu as pltpu


def _make_fused_mlp_kernel(n_layers: int, compute_dtype):
    """Build kernel(x_ref, w1,b1, ..., wN,bN, o_ref).

    Weights arrive pre-transposed as [IN, OUT] so the MXU contracts over IN
    with no in-kernel relayout. Hidden activations stay on-chip.
    """

    def kernel(x_ref, *refs):
        o_ref = refs[-1]
        h = x_ref[...]
        for i in range(n_layers):
            w_ref = refs[2 * i]
            b_ref = refs[2 * i + 1]
            # MXU matmul with f32 accumulation; bias add + tanh on VPU/EUP.
            h = jnp.dot(
                h.astype(compute_dtype),
                w_ref[...],
                preferred_element_type=jnp.float32,
            ) + b_ref[...].astype(jnp.float32)
            if i < n_layers - 1:
                h = jnp.tanh(h)  # EUP slot; intermediate never hits HBM
        o_ref[...] = h.astype(o_ref.dtype)

    return kernel


def mlp_forward(x, params, *, tm=None):
    """Fused MLP forward. params: list of (w_t [IN, OUT], b [1, OUT])."""
    B, IN = x.shape
    n_layers = len(params)
    OUT = params[-1][0].shape[1]

    # Batch tile: whole batch for small B, otherwise 512-row tiles (8-aligned,
    # VMEM-friendly). Ragged final tiles are fine (pl.cdiv + block masking).
    # TODO(synk): for very wide hidden dims also tile OUT / the hidden K loop
    # and budget against v7x's 64 MiB VMEM via vmem_limit_bytes.
    if tm is None:
        tm = B if B <= 512 else 512
    grid = (pl.cdiv(B, tm),)

    in_specs = [pl.BlockSpec((tm, IN), lambda i: (i, 0))]
    flat_args = [x]
    for (w_t, b) in params:
        # Constant index_map -> weights/biases fetched once and stay resident.
        in_specs.append(pl.BlockSpec(w_t.shape, lambda i: (0, 0)))
        in_specs.append(pl.BlockSpec(b.shape, lambda i: (0, 0)))
        flat_args.append(w_t)
        flat_args.append(b)

    # Advisory cost estimate for XLA scheduling of this small custom call.
    itemsize = x.dtype.itemsize
    flops = 0
    transcendentals = 0
    bytes_accessed = x.size * itemsize + B * OUT * itemsize
    for i, (w_t, b) in enumerate(params):
        fin, fout = w_t.shape
        flops += 2 * B * fin * fout + B * fout
        if i < n_layers - 1:
            transcendentals += B * fout
        bytes_accessed += w_t.size * w_t.dtype.itemsize + b.size * b.dtype.itemsize

    return pl.pallas_call(
        _make_fused_mlp_kernel(n_layers, x.dtype),
        out_shape=jax.ShapeDtypeStruct((B, OUT), x.dtype),
        grid=grid,
        in_specs=in_specs,
        out_specs=pl.BlockSpec((tm, OUT), lambda i: (i, 0)),
        compiler_params=pltpu.CompilerParams(
            dimension_semantics=("parallel",),
        ),
        cost_estimate=pl.CostEstimate(
            flops=flops,
            transcendentals=transcendentals,
            bytes_accessed=bytes_accessed,
        ),
    )(*flat_args)


def init_mlp_params(key, sizes, dtype=jnp.float32):
    """Deterministic init matching nn.Linear (W [out,in], b [out]); the weight
    is transposed ONCE here to [in,out] so the kernel never transposes."""
    params = []
    for i in range(len(sizes) - 1):
        key, kw, kb = jax.random.split(key, 3)
        fan_in = sizes[i]
        bound = 1.0 / (fan_in ** 0.5)
        w = jax.random.uniform(
            kw, (sizes[i + 1], sizes[i]), dtype, minval=-bound, maxval=bound
        )
        b = jax.random.uniform(
            kb, (1, sizes[i + 1]), dtype, minval=-bound, maxval=bound
        )
        params.append((w.T, b))  # one-time host-side transpose -> [in, out]
    return params


def mlp_reference(x, params):
    n = len(params)
    for i, (w_t, b) in enumerate(params):
        x = x @ w_t + b
        if i < n - 1:
            x = jnp.tanh(x)
    return x


if __name__ == "__main__":
    # MLP(sizes): Linear(16,32) - Tanh - Linear(32,32) - Tanh - Linear(32,8)
    sizes = (16, 32, 32, 8)
    batch = 8

    key = jax.random.PRNGKey(0)
    key, kx = jax.random.split(key)
    x = jax.random.normal(kx, (batch, sizes[0]), jnp.float32)
    params = init_mlp_params(key, sizes)

    fwd = jax.jit(functools.partial(mlp_forward))
    out = jax.block_until_ready(fwd(x, params))
    ref = mlp_reference(x, params)
    assert out.shape == (batch, sizes[-1])
    assert jnp.allclose(out, ref, atol=1e-5, rtol=1e-5)
    print("KERNEL_OK")
</pallas_src>

<mosaic_0001>
module attributes {stable_mosaic.version = 11 : i64} {
  func.func @kernel(%arg0: i32, %arg1: memref<8x16xf32, #tpu.memory_space<vmem>>, %arg2: memref<16x32xf32, #tpu.memory_space<vmem>>, %arg3: memref<1x32xf32, #tpu.memory_space<vmem>>, %arg4: memref<32x32xf32, #tpu.memory_space<vmem>>, %arg5: memref<1x32xf32, #tpu.memory_space<vmem>>, %arg6: memref<32x8xf32, #tpu.memory_space<vmem>>, %arg7: memref<1x8xf32, #tpu.memory_space<vmem>>, %arg8: memref<8x8xf32, #tpu.memory_space<vmem>>) attributes {dimension_semantics = [#tpu.dimension_semantics<parallel>], iteration_bounds = array<i64: 1>, scalar_prefetch = 0 : i64, scratch_operands = 0 : i64, tpu.core_type = #tpu.core_type<tc>, window_params = [{transform_indices = @transform_0, window_bounds = array<i64: 8, 16>}, {pipeline_mode = #tpu.pipeline_mode<synchronous>, transform_indices = @transform_1, window_bounds = array<i64: 16, 32>}, {pipeline_mode = #tpu.pipeline_mode<synchronous>, transform_indices = @transform_2, window_bounds = array<i64: 1, 32>}, {pipeline_mode = #tpu.pipeline_mode<synchronous>, transform_indices = @transform_3, window_bounds = array<i64: 32, 32>}, {pipeline_mode = #tpu.pipeline_mode<synchronous>, transform_indices = @transform_4, window_bounds = array<i64: 1, 32>}, {pipeline_mode = #tpu.pipeline_mode<synchronous>, transform_indices = @transform_5, window_bounds = array<i64: 32, 8>}, {pipeline_mode = #tpu.pipeline_mode<synchronous>, transform_indices = @transform_6, window_bounds = array<i64: 1, 8>}, {transform_indices = @transform_7, window_bounds = array<i64: 8, 8>}]} {
    %c0 = arith.constant 0 : index
    %c0_0 = arith.constant 0 : index
    %0 = vector.load %arg1[%c0, %c0_0] : memref<8x16xf32, #tpu.memory_space<vmem>>, vector<8x16xf32>
    %c0_1 = arith.constant 0 : index
    %c0_2 = arith.constant 0 : index
    %1 = vector.load %arg2[%c0_1, %c0_2] : memref<16x32xf32, #tpu.memory_space<vmem>>, vector<16x32xf32>
    %cst = arith.constant dense<0.000000e+00> : vector<8x32xf32>
    %2 = tpu.matmul %0, %1, %cst {dimension_numbers = #tpu.dot_dimension_numbers<[1], [0], [0], [1], [0, 0, 1, 1], [], []>} : vector<8x16xf32>, vector<16x32xf32>, vector<8x32xf32> -> vector<8x32xf32>
    %c0_3 = arith.constant 0 : index
    %c0_4 = arith.constant 0 : index
    %3 = vector.load %arg3[%c0_3, %c0_4] : memref<1x32xf32, #tpu.memory_space<vmem>>, vector<1x32xf32>
    %4 = vector.broadcast %3 : vector<1x32xf32> to vector<8x32xf32>
    %5 = arith.addf %2, %4 : vector<8x32xf32>
    %6 = math.tanh %5 : vector<8x32xf32>
    %c0_5 = arith.constant 0 : index
    %c0_6 = arith.constant 0 : index
    %7 = vector.load %arg4[%c0_5, %c0_6] : memref<32x32xf32, #tpu.memory_space<vmem>>, vector<32x32xf32>
    %cst_7 = arith.constant dense<0.000000e+00> : vector<8x32xf32>
    %8 = tpu.matmul %6, %7, %cst_7 {dimension_numbers = #tpu.dot_dimension_numbers<[1], [0], [0], [1], [0, 0, 1, 1], [], []>} : vector<8x32xf32>, vector<32x32xf32>, vector<8x32xf32> -> vector<8x32xf32>
    %c0_8 = arith.constant 0 : index
    %c0_9 = arith.constant 0 : index
    %9 = vector.load %arg5[%c0_8, %c0_9] : memref<1x32xf32, #tpu.memory_space<vmem>>, vector<1x32xf32>
    %10 = vector.broadcast %9 : vector<1x32xf32> to vector<8x32xf32>
    %11 = arith.addf %8, %10 : vector<8x32xf32>
    %12 = math.tanh %11 : vector<8x32xf32>
    %c0_10 = arith.constant 0 : index
    %c0_11 = arith.constant 0 : index
    %13 = vector.load %arg6[%c0_10, %c0_11] : memref<32x8xf32, #tpu.memory_space<vmem>>, vector<32x8xf32>
    %cst_12 = arith.constant dense<0.000000e+00> : vector<8x8xf32>
    %14 = tpu.matmul %12, %13, %cst_12 {dimension_numbers = #tpu.dot_dimension_numbers<[1], [0], [0], [1], [0, 0, 1, 1], [], []>} : vector<8x32xf32>, vector<32x8xf32>, vector<8x8xf32> -> vector<8x8xf32>
    %c0_13 = arith.constant 0 : index
    %c0_14 = arith.constant 0 : index
    %15 = vector.load %arg7[%c0_13, %c0_14] : memref<1x8xf32, #tpu.memory_space<vmem>>, vector<1x8xf32>
    %16 = vector.broadcast %15 : vector<1x8xf32> to vector<8x8xf32>
    %17 = arith.addf %14, %16 : vector<8x8xf32>
    %c0_15 = arith.constant 0 : index
    %c0_16 = arith.constant 0 : index
    %18 = vector.load %arg8[%c0_15, %c0_16] : memref<8x8xf32, #tpu.memory_space<vmem>>, vector<8x8xf32>
    tpu.vector_store %arg8[%c0_15, %c0_16], %17 {strides = array<i32>} : memref<8x8xf32, #tpu.memory_space<vmem>>, vector<8x8xf32>,
    return
  }
  func.func @transform_0(%arg0: i32) -> (i32, i32) {
    %c0_i32 = arith.constant 0 : i32
    %c0_i32_0 = arith.constant 0 : i32
    return %arg0, %c0_i32 : i32, i32
  }
  func.func @transform_1(%arg0: i32) -> (i32, i32) {
    %c0_i32 = arith.constant 0 : i32
    %c0_i32_0 = arith.constant 0 : i32
    %c0_i32_1 = arith.constant 0 : i32
    return %c0_i32, %c0_i32_0 : i32, i32
  }
  func.func @transform_2(%arg0: i32) -> (i32, i32) {
    %c0_i32 = arith.constant 0 : i32
    %c0_i32_0 = arith.constant 0 : i32
    %c0_i32_1 = arith.constant 0 : i32
    return %c0_i32, %c0_i32_0 : i32, i32
  }
  func.func @transform_3(%arg0: i32) -> (i32, i32) {
    %c0_i32 = arith.constant 0 : i32
    %c0_i32_0 = arith.constant 0 : i32
    %c0_i32_1 = arith.constant 0 : i32
    return %c0_i32, %c0_i32_0 : i32, i32
  }
  func.func @transform_4(%arg0: i32) -> (i32, i32) {
    %c0_i32 = arith.constant 0 : i32
    %c0_i32_0 = arith.constant 0 : i32
    %c0_i32_1 = arith.constant 0 : i32
    return %c0_i32, %c0_i32_0 : i32, i32
  }
  func.func @transform_5(%arg0: i32) -> (i32, i32) {
    %c0_i32 = arith.constant 0 : i32
    %c0_i32_0 = arith.constant 0 : i32
    %c0_i32_1 = arith.constant 0 : i32
    return %c0_i32, %c0_i32_0 : i32, i32
  }
  func.func @transform_6(%arg0: i32) -> (i32, i32) {
    %c0_i32 = arith.constant 0 : i32
    %c0_i32_0 = arith.constant 0 : i32
    %c0_i32_1 = arith.constant 0 : i32
    return %c0_i32, %c0_i32_0 : i32, i32
  }
  func.func @transform_7(%arg0: i32) -> (i32, i32) {
    %c0_i32 = arith.constant 0 : i32
    %c0_i32_0 = arith.constant 0 : i32
    return %arg0, %c0_i32 : i32, i32
  }
}

</mosaic_0001>

<bundles_post_ra>
// kernel: mlp_forward.1
= control target key start
LH: loop header
LB: loop body
LE: loop exit
PB: predicated region body
PF: predicated region fallthrough
CT: control target
= control target key end

     0   :  { %12 = vsyncpa [#allocation3], 0  ;;  %s541_s0 = inlined_call_operand.hbm [shape: f32[8,16], index: 0, kind: input, shape index: {}]   ;;  %s542_s1 = inlined_call_operand.vmem [shape: f32[16,32], index: 1, kind: input, shape index: {}]   ;;  %s543_s2 = inlined_call_operand.vmem [shape: f32[1,32], index: 2, kind: input, shape index: {}]   ;;  %s544_s3 = inlined_call_operand.vmem [shape: f32[32,32], index: 3, kind: input, shape index: {}]   ;;  %s545_s4 = inlined_call_operand.vmem [shape: f32[1,32], index: 4, kind: input, shape index: {}]   ;;  %s546_s5 = inlined_call_operand.vmem [shape: f32[32,8], index: 5, kind: input, shape index: {}]   ;;  %s547_s6 = inlined_call_operand.vmem [shape: f32[1,8], index: 6, kind: input, shape index: {}]   ;;  %s548_s7 = inlined_call_operand.hbm [shape: f32[8,8], index: 7, kind: output, shape index: {}]  }
   0x1   :  { %13 = vsyncpa [#allocation4], 0  ;;  %s431_s24 = smov [#allocation2]   ;;  %s383_s28 = scalar_lea.hbm %s541_s0, 128 }
   0x2   :  { %s20_s25 = sshll.u32 %s431_s24, 4  ;;  %p384_p0 = scmp.ne.s32.totalorder %s541_s0, %s383_s28  ;;  %s21_s25 = int_to_ptr.vmem [resolvable:$true] %s20_s25 }
   0x3   :  { %p387_p1 = scmp.lt.u32.totalorder %s383_s28, %s541_s0 }
   0x5   :  { %p389_p2 = pnand %p387_p1, %p384_p0 }
   0x7   :  { %392 = shalt.err (!%p389_p2)
}
   0x8   :  { %s393_s10 = scalar_lea.vmem %s21_s25, 128  ;;  %p398_p4 = scmp.lt.s32.totalorder %s21_s25, %s21_s25 }
   0x9   :  { %p394_p3 = scmp.ne.s32.totalorder %s21_s25, %s393_s10  ;;  %p399_p5 = scmp.lt.s32.totalorder %s393_s10, %s393_s10 }
   0xb   :  { %p400_p6 = por %p399_p5, %p398_p4 }
   0xd   :  { %p401_p7 = pnand %p400_p6, %p394_p3 }
   0xf   :  { %404 = shalt.err (!%p401_p7)
}
  0x10   :  { %23 = dma.hbm_to_vmem [thread:$0]  %s541_s0, 128, %s21_s25, [#allocation3]  }
  0x11   :  { %427 = dma.done.wait [#allocation3], 128  }
  0x12   :  { %428 = vsyncadd [#allocation3], 4294967168  ;;  %v432_v0 = vmov 0.0|0.0   ;;  %vm433_vm0 = vmmov 0   ;;  %v434_v1 = vmov 0.0   ;;  %v40_v2 = vld [vmem:[%s542_s1] sm:$0xff] }
  0x13   :  { %359 = vmatprep.subr.bf16.mxu0 %v432_v0  ;;  %334 = vmatprep.mubr.msk.f32.mxu0 %vm433_vm0, %v434_v1  ;;  %v41_v3 = vld [vmem:[%s542_s1 + $0x8] sm:$0xff]  ;;  %v39_v5 = vld [vmem:[#allocation2] sm:$0xff]  ;;  %vm49_vm1 = vcmask 130048   ;;  %v126_v8 = vld [vmem:[%s544_s3 + $0x10] sm:$0xff]  ;;  %vm135_vm2 = vcmask 261120   ;;  %vm294_vm3 = vcmask 64512  }
  0x14   :  { %362 = vmatprep.subr.bf16.mxu1 %v432_v0  ;;  %345 = vmatprep.mubr.msk.f32.mxu1 %vm433_vm0, %v434_v1  ;;  %v360_v4 = vpack.c.bf16 %v41_v3, %v40_v2  ;;  %v124_v6 = vld [vmem:[%s544_s3] sm:$0xff]  ;;  %v125_v7 = vld [vmem:[%s544_s3 + $0x8] sm:$0xff]  ;;  %v127_v10 = vld [vmem:[%s544_s3 + $0x18] sm:$0xff] }
  0x15   :  { %v363_v9 = vpack.c.bf16 %v125_v7, %v124_v6  ;;  %v366_v11 = vpack.c.bf16 %v127_v10, %v126_v8  ;;  %v311_v12 = vld [vmem:[%s543_s2] ss:$0 sm:$0xff]  ;;  %v211_v18 = vld [vmem:[%s546_s5 + $0x8] sm:$0xff]  ;;  %v212_v19 = vld [vmem:[%s546_s5 + $0x10] sm:$0xff] }
  0x16   :  { %361 = vmatpush3.bf16.msra.mxu0 %v360_v4  ;;  %v210_v17 = vld [vmem:[%s546_s5] sm:$0xff]  ;;  %v213_v21 = vld [vmem:[%s546_s5 + $0x18] sm:$0xff]  ;;  %s435_s5 = smov [#allocation5]  }
  0x17   :  { %368 = vmatprep.subr.bf16.mxu0 %v432_v0  ;;  %364 = vmatpush3.bf16.msra.mxu1 %v363_v9  ;;  %v369_v20 = vpack.c.bf16 %v211_v18, %v210_v17  ;;  %v372_v22 = vpack.c.bf16 %v213_v21, %v212_v19  ;;  %v313_v23 = vld [vmem:[%s545_s4] ss:$0 sm:$0xff]  ;;  %s302_s12 = sshll.u32 %s435_s5, 4  ;;  %s303_s12 = int_to_ptr.vmem [resolvable:$true] %s302_s12 }
  0x18   :  { %365 = vmatprep.subr.bf16.mxu1 %v432_v0  ;;  %v315_v28 = vld [vmem:[%s547_s6] ss:$0 sm:$0xff]  ;;  %s405_s4 = scalar_lea.vmem %s303_s12, 128  ;;  %p410_p9 = scmp.lt.s32.totalorder %s303_s12, %s303_s12 }
  0x19   :  { %335 = vmatmul.mubr.msk.f32.vlgmr.msra.gmra.mrb[0].mxu0 %vm49_vm1, %v39_v5  ;;  %p406_p8 = scmp.ne.s32.totalorder %s303_s12, %s405_s4  ;;  %p411_p10 = scmp.lt.s32.totalorder %s405_s4, %s405_s4 }
  0x1a   :  { %356 = vmatprep.mubr.msk.f32.mxu0 %vm433_vm0, %v434_v1  ;;  %370 = vmatpush3.bf16.msra.mxu0 %v369_v20 }
  0x1b   :  { %367 = vmatpush3.bf16.msra.mxu1 %v366_v11  ;;  %371 = vmatprep.subr.bf16.mxu0 %v432_v0  ;;  %p412_p11 = por %p411_p10, %p410_p9 }
  0x1d   :  { %p413_p12 = pnand %p412_p11, %p406_p8 }
  0x1e   :  { %373 = vmatpush3.bf16.msra.mxu0 %v372_v22 }
  0xec   :  { %v119_v13 = vpop.f32.mrb[0].mxu0 }
  0xed   :  { %v120_v14 = vadd.f32 %v311_v12, %v119_v13  ;;  %v336_v15 = vpop.f32.mrb[1].mxu0 }
  0xef   :  { %379 = vtanh.f32 %v120_v14 }
  0xf9   :  { %v380_v16 = vpop.eup %379 }
  0xfa   :  { %346 = vmatmul.mubr.msk.f32.vlgmr.msra.gmra.mrb[0].mxu1 %vm135_vm2, %v380_v16 }
 0x1cd   :  { %v205_v24 = vpop.f32.mrb[0].mxu1 }
 0x1ce   :  { %v206_v25 = vadd.f32 %v313_v23, %v205_v24  ;;  %v347_v26 = vpop.f32.mrb[1].mxu1 }
 0x1d0   :  { %381 = vtanh.f32 %v206_v25 }
 0x1da   :  { %v382_v27 = vpop.eup %381 }
 0x1db   :  { %357 = vmatmul.mubr.msk.f32.vlgmr.msra.gmra.mrb[2].mxu0 %vm135_vm2, %v382_v27 }
 0x2ae   :  { %v290_v29 = vpop.f32.mrb[2].mxu0 }
 0x2af   :  { %v291_v30 = vadd.f32 %v315_v28, %v290_v29  ;;  %v358_v31 = vpop.f32.mrb[3].mxu0 }
 0x2b1   :  { %295 = vst.msk [vmem:[#allocation5] sm:$0xff] %vm294_vm3, %v291_v30 }
 0x2b2   :  { %416 = shalt.err (!%p413_p12)
}
 0x2b3   :  { %s417_s15 = scalar_lea.hbm %s548_s7, 128 }
 0x2b4   :  { %p418_p13 = scmp.ne.s32.totalorder %s548_s7, %s417_s15  ;;  %p421_p0 = scmp.lt.u32.totalorder %s417_s15, %s548_s7 }
 0x2b6   :  { %p423_p1 = pnand %p421_p0, %p418_p13 }
 0x2b8   :  { %426 = shalt.err (!%p423_p1)
}
 0x2b9   :  { %305 = dma.vmem_to_hbm [thread:$0]  %s303_s12, 128, %s548_s7, [#allocation4]  }
 0x2ba   :  { %429 = dma.done.wait [#allocation4], 128  }
 0x2bb   :  { %430 = vsyncadd [#allocation4], 4294967168 }
 0x2bc   :  { %309 = vsyncpa [#allocation3], 1 }
 0x2bd   :  { %310 = vsyncpa [#allocation4], 1 }

</bundles_post_ra>
